<compile_context>
chip_gen: v7x
topology: tpu7x:2x2x1
jax: 0.10.0
libtpu: 0.0.40
codegen_flags: <defaults>
</compile_context>

<pallas_src>
import jax
import jax.numpy as jnp
from jax.experimental import pallas as pl
from jax.experimental.pallas import tpu as pltpu

POINTS = 4
D_IN = POINTS * 2 + 1   # 9
D_H1 = 16
D_H2 = 32
D_OUT = POINTS * 2 + 1  # 9

# Lane-axis tile caps.  Double-buffered x/out blocks + the f32 h1/h2
# intermediates at these caps stay well under the v7x scoped-VMEM budget while
# each grid step moves >= ~1 MiB of HBM data.
_BT_CAP_F32 = 16384
_BT_CAP_BF16 = 32768
_VMEM_LIMIT_BYTES = 48 * 1024 * 1024   # > worst-case use (~18 MiB), < v7x 64 MiB physical
_SMALL_BATCH_THRESHOLD = 2048


def _round_up(n, m):
    return -(-n // m) * m


def _tile_cap(compute_dtype):
    if compute_dtype is None:
        return _BT_CAP_F32
    return _BT_CAP_BF16 if jnp.dtype(compute_dtype).itemsize <= 2 else _BT_CAP_F32


def _pick_batch_tile(batch, compute_dtype):
    """Adaptive lane-axis tile: as large as the VMEM budget allows, split into
    >= 2 grid steps (both v7x TensorCores get work under
    dimension_semantics=('parallel',)), rounded to 128 so ragged-tail pad waste
    stays < num_tiles * 128 columns."""
    cap = _tile_cap(compute_dtype)
    n_tiles = max(2, -(-batch // cap))
    return max(128, _round_up(-(-batch // n_tiles), 128))


def _mlp_kernel(x_ref, w1_ref, b1_ref, w2_ref, b2_ref, w3_ref, b3_ref, o_ref):
    # Whole 3-layer MLP fused per batch tile.  Batch on lanes -> lane-dense
    # intermediates and output; weights are tiny and VMEM-resident.  Bias adds
    # and ReLU stay on the f32 accumulator (no extra casts).
    x = x_ref[...]

    h1 = jnp.dot(w1_ref[...], x, preferred_element_type=jnp.float32) + b1_ref[...]
    h1 = jnp.maximum(h1, 0.0)

    h2 = jnp.dot(w2_ref[...], h1.astype(w2_ref.dtype),
                 preferred_element_type=jnp.float32) + b2_ref[...]
    h2 = jnp.maximum(h2, 0.0)

    out = jnp.dot(w3_ref[...], h2.astype(w3_ref.dtype),
                  preferred_element_type=jnp.float32) + b3_ref[...]
    o_ref[...] = out.astype(o_ref.dtype)


def generator_forward_fm(xt, params, *, batch_tile=None, compute_dtype=jnp.bfloat16):
    """Feature-major entry point: xt [9, B] -> [9, B].

    Zero-copy path (no relayout HBM passes) — callers that can keep data
    feature-major should use this directly.

    batch_tile: MAIN performance knob; lane-axis tile of the batch, multiple of
    128.  None -> adaptive (up to 16K f32 / 32K bf16, grid >= 2, small pad
    waste).  compute_dtype: streaming dtype for x and weights (f32 accumulation
    and f32 biases kept).  bf16 is the default on all generations; None = f32.
    """
    w1, b1, w2, b2, w3, b3 = params
    d_in, batch = xt.shape
    assert d_in == D_IN
    out_dtype = xt.dtype                      # captured before any low-precision cast

    if compute_dtype is not None:
        xt = xt.astype(compute_dtype)
        w1, w2, w3 = (w.astype(compute_dtype) for w in (w1, w2, w3))
    b1, b2, b3 = (b.astype(jnp.float32) for b in (b1, b2, b3))

    if batch_tile is None:
        batch_tile = _pick_batch_tile(batch, compute_dtype)
    assert batch_tile % 128 == 0, "batch_tile must be a multiple of 128 (lane width)"

    b_pad = _round_up(batch, batch_tile)
    if b_pad != batch:
        # Only the ragged tail tile's worth of zero columns; sliced away below.
        xt = jnp.pad(xt, ((0, 0), (0, b_pad - batch)))

    grid = (b_pad // batch_tile,)

    def resident(a):
        nd = a.ndim
        return pl.BlockSpec(a.shape, lambda i: (0,) * nd)   # full array, VMEM-resident

    # Optional further knob: pipeline_mode=pl.Buffered(3) on x_spec hides DMA
    # jitter once tiles are large; left at default double-buffering for safety.
    x_spec = pl.BlockSpec((D_IN, batch_tile), lambda i: (0, i))

    out_t = pl.pallas_call(
        _mlp_kernel,
        out_shape=jax.ShapeDtypeStruct((D_OUT, b_pad), out_dtype),
        grid_spec=pltpu.PrefetchScalarGridSpec(
            num_scalar_prefetch=0,
            grid=grid,
            in_specs=[
                x_spec,
                resident(w1), resident(b1),
                resident(w2), resident(b2),
                resident(w3), resident(b3),
            ],
            out_specs=pl.BlockSpec((D_OUT, batch_tile), lambda i: (0, i)),
        ),
        compiler_params=pltpu.CompilerParams(
            dimension_semantics=("parallel",),
            vmem_limit_bytes=_VMEM_LIMIT_BYTES,
        ),
    )(xt, w1, b1, w2, b2, w3, b3)

    return out_t[:, :batch]


def generator_forward(x, params, *, batch_tile=None, compute_dtype=jnp.bfloat16,
                      small_batch_threshold=_SMALL_BATCH_THRESHOLD):
    """PyTorch-compatible entry point: x [B, 9] -> [B, 9] (nn.Linear semantics).

    * B < small_batch_threshold (and no explicit batch_tile): plain fused XLA
      ops — at tiny B a Pallas launch + relayout is pure fixed overhead.
    * Otherwise: one transpose to feature-major, the fused Pallas kernel, one
      transpose back.  The transposes are layout plumbing only; callers that
      can hold activations feature-major should call generator_forward_fm and
      skip them entirely.
    """
    batch = x.shape[0]
    if batch_tile is None and batch < small_batch_threshold:
        return generator_reference(x, params)
    out_t = generator_forward_fm(x.T, params, batch_tile=batch_tile,
                                 compute_dtype=compute_dtype)
    return out_t.T


def init_params(key):
    """Deterministic init mirroring nn.Linear: W stored as [out, in], b as [out, 1]."""
    ks = jax.random.split(key, 6)

    def linear(kw, kb, fan_in, fan_out):
        bound = 1.0 / jnp.sqrt(fan_in)
        w = jax.random.uniform(kw, (fan_out, fan_in), jnp.float32, -bound, bound)
        b = jax.random.uniform(kb, (fan_out, 1), jnp.float32, -bound, bound)
        return w, b

    w1, b1 = linear(ks[0], ks[1], D_IN, D_H1)
    w2, b2 = linear(ks[2], ks[3], D_H1, D_H2)
    w3, b3 = linear(ks[4], ks[5], D_H2, D_OUT)
    return (w1, b1, w2, b2, w3, b3)


def generator_reference(x, params):
    w1, b1, w2, b2, w3, b3 = params
    h1 = jnp.maximum(x @ w1.T + b1.T, 0.0)
    h2 = jnp.maximum(h1 @ w2.T + b2.T, 0.0)
    return h2 @ w3.T + b3.T


if __name__ == "__main__":
    key = jax.random.PRNGKey(0)
    k_x, k_x2, k_p = jax.random.split(key, 3)
    params = init_params(k_p)

    # (1) Typical tiny batch -> XLA fast path (no Pallas launch, no transposes).
    B = 8
    x = jax.random.normal(k_x, (B, D_IN), jnp.float32)
    ref = generator_reference(x, params)
    out = jax.block_until_ready(generator_forward(x, params))
    assert out.shape == (B, D_OUT)
    assert jnp.allclose(out, ref, atol=1e-5, rtol=1e-5), "fast-path mismatch"

    # (2) Force the Pallas kernel at the same small shape (f32 streaming).
    out_p = jax.block_until_ready(
        generator_forward(x, params, batch_tile=128, compute_dtype=None))
    assert jnp.allclose(out_p, ref, atol=1e-5, rtol=1e-5), "f32 Pallas mismatch"

    # (3) Ragged batch through the Pallas path with adaptive tiling (grid >= 2),
    #     f32 streaming for a tight numerical check.
    B2 = 2241   # >= threshold, not a multiple of 128 -> exercises padding
    x2 = jax.random.normal(k_x2, (B2, D_IN), jnp.float32)
    ref2 = generator_reference(x2, params)
    out2 = jax.block_until_ready(generator_forward(x2, params, compute_dtype=None))
    assert out2.shape == (B2, D_OUT)
    assert jnp.allclose(out2, ref2, atol=1e-5, rtol=1e-5), "multi-tile f32 mismatch"

    # (4) Default bf16-streaming path (f32 accumulation); looser tolerance.
    out2_bf16 = jax.block_until_ready(generator_forward(x2, params))
    assert jnp.allclose(out2_bf16, ref2, atol=5e-2, rtol=5e-2), "bf16 mismatch"

    # (5) Feature-major entry point: zero wrapper transposes.
    out_fm = jax.block_until_ready(
        generator_forward_fm(x2.T, params, compute_dtype=None))
    assert jnp.allclose(out_fm.T, ref2, atol=1e-5, rtol=1e-5), "feature-major mismatch"

    print("KERNEL_OK")
</pallas_src>

<mosaic_0001>
module attributes {stable_mosaic.version = 11 : i64} {
  func.func @_mlp_kernel(%arg0: i32, %arg1: memref<9x128xf32, #tpu.memory_space<vmem>>, %arg2: memref<16x9xf32, #tpu.memory_space<vmem>>, %arg3: memref<16x1xf32, #tpu.memory_space<vmem>>, %arg4: memref<32x16xf32, #tpu.memory_space<vmem>>, %arg5: memref<32x1xf32, #tpu.memory_space<vmem>>, %arg6: memref<9x32xf32, #tpu.memory_space<vmem>>, %arg7: memref<9x1xf32, #tpu.memory_space<vmem>>, %arg8: memref<9x128xf32, #tpu.memory_space<vmem>>) attributes {dimension_semantics = [#tpu.dimension_semantics<parallel>], iteration_bounds = array<i64: 1>, scalar_prefetch = 0 : i64, scratch_operands = 0 : i64, tpu.core_type = #tpu.core_type<tc>, window_params = [{transform_indices = @transform_0, window_bounds = array<i64: 9, 128>}, {pipeline_mode = #tpu.pipeline_mode<synchronous>, transform_indices = @transform_1, window_bounds = array<i64: 16, 9>}, {pipeline_mode = #tpu.pipeline_mode<synchronous>, transform_indices = @transform_2, window_bounds = array<i64: 16, 1>}, {pipeline_mode = #tpu.pipeline_mode<synchronous>, transform_indices = @transform_3, window_bounds = array<i64: 32, 16>}, {pipeline_mode = #tpu.pipeline_mode<synchronous>, transform_indices = @transform_4, window_bounds = array<i64: 32, 1>}, {pipeline_mode = #tpu.pipeline_mode<synchronous>, transform_indices = @transform_5, window_bounds = array<i64: 9, 32>}, {pipeline_mode = #tpu.pipeline_mode<synchronous>, transform_indices = @transform_6, window_bounds = array<i64: 9, 1>}, {transform_indices = @transform_7, window_bounds = array<i64: 9, 128>}]} {
    %c0 = arith.constant 0 : index
    %c0_0 = arith.constant 0 : index
    %0 = vector.load %arg1[%c0, %c0_0] : memref<9x128xf32, #tpu.memory_space<vmem>>, vector<9x128xf32>
    %c0_1 = arith.constant 0 : index
    %c0_2 = arith.constant 0 : index
    %1 = vector.load %arg2[%c0_1, %c0_2] : memref<16x9xf32, #tpu.memory_space<vmem>>, vector<16x9xf32>
    %cst = arith.constant dense<0.000000e+00> : vector<16x128xf32>
    %2 = tpu.matmul %1, %0, %cst {dimension_numbers = #tpu.dot_dimension_numbers<[1], [0], [0], [1], [0, 0, 1, 1], [], []>} : vector<16x9xf32>, vector<9x128xf32>, vector<16x128xf32> -> vector<16x128xf32>
    %c0_3 = arith.constant 0 : index
    %c0_4 = arith.constant 0 : index
    %3 = vector.load %arg3[%c0_3, %c0_4] : memref<16x1xf32, #tpu.memory_space<vmem>>, vector<16x1xf32>
    %4 = vector.broadcast %3 : vector<16x1xf32> to vector<16x128xf32>
    %5 = arith.addf %2, %4 : vector<16x128xf32>
    %cst_5 = arith.constant 0.000000e+00 : f32
    %6 = vector.broadcast %cst_5 : f32 to vector<16x128xf32>
    %7 = arith.maximumf %5, %6 : vector<16x128xf32>
    %c0_6 = arith.constant 0 : index
    %c0_7 = arith.constant 0 : index
    %8 = vector.load %arg4[%c0_6, %c0_7] : memref<32x16xf32, #tpu.memory_space<vmem>>, vector<32x16xf32>
    %cst_8 = arith.constant dense<0.000000e+00> : vector<32x128xf32>
    %9 = tpu.matmul %8, %7, %cst_8 {dimension_numbers = #tpu.dot_dimension_numbers<[1], [0], [0], [1], [0, 0, 1, 1], [], []>} : vector<32x16xf32>, vector<16x128xf32>, vector<32x128xf32> -> vector<32x128xf32>
    %c0_9 = arith.constant 0 : index
    %c0_10 = arith.constant 0 : index
    %10 = vector.load %arg5[%c0_9, %c0_10] : memref<32x1xf32, #tpu.memory_space<vmem>>, vector<32x1xf32>
    %11 = vector.broadcast %10 : vector<32x1xf32> to vector<32x128xf32>
    %12 = arith.addf %9, %11 : vector<32x128xf32>
    %cst_11 = arith.constant 0.000000e+00 : f32
    %13 = vector.broadcast %cst_11 : f32 to vector<32x128xf32>
    %14 = arith.maximumf %12, %13 : vector<32x128xf32>
    %c0_12 = arith.constant 0 : index
    %c0_13 = arith.constant 0 : index
    %15 = vector.load %arg6[%c0_12, %c0_13] : memref<9x32xf32, #tpu.memory_space<vmem>>, vector<9x32xf32>
    %cst_14 = arith.constant dense<0.000000e+00> : vector<9x128xf32>
    %16 = tpu.matmul %15, %14, %cst_14 {dimension_numbers = #tpu.dot_dimension_numbers<[1], [0], [0], [1], [0, 0, 1, 1], [], []>} : vector<9x32xf32>, vector<32x128xf32>, vector<9x128xf32> -> vector<9x128xf32>
    %c0_15 = arith.constant 0 : index
    %c0_16 = arith.constant 0 : index
    %17 = vector.load %arg7[%c0_15, %c0_16] : memref<9x1xf32, #tpu.memory_space<vmem>>, vector<9x1xf32>
    %18 = vector.broadcast %17 : vector<9x1xf32> to vector<9x128xf32>
    %19 = arith.addf %16, %18 : vector<9x128xf32>
    %c0_17 = arith.constant 0 : index
    %c0_18 = arith.constant 0 : index
    %20 = vector.load %arg8[%c0_17, %c0_18] : memref<9x128xf32, #tpu.memory_space<vmem>>, vector<9x128xf32>
    tpu.vector_store %arg8[%c0_17, %c0_18], %19 {strides = array<i32>} : memref<9x128xf32, #tpu.memory_space<vmem>>, vector<9x128xf32>,
    return
  }
  func.func @transform_0(%arg0: i32) -> (i32, i32) {
    %c0_i32 = arith.constant 0 : i32
    %c0_i32_0 = arith.constant 0 : i32
    return %c0_i32, %arg0 : i32, i32
  }
  func.func @transform_1(%arg0: i32) -> (i32, i32) {
    %c0_i32 = arith.constant 0 : i32
    %c0_i32_0 = arith.constant 0 : i32
    %c0_i32_1 = arith.constant 0 : i32
    return %c0_i32, %c0_i32_0 : i32, i32
  }
  func.func @transform_2(%arg0: i32) -> (i32, i32) {
    %c0_i32 = arith.constant 0 : i32
    %c0_i32_0 = arith.constant 0 : i32
    %c0_i32_1 = arith.constant 0 : i32
    return %c0_i32, %c0_i32_0 : i32, i32
  }
  func.func @transform_3(%arg0: i32) -> (i32, i32) {
    %c0_i32 = arith.constant 0 : i32
    %c0_i32_0 = arith.constant 0 : i32
    %c0_i32_1 = arith.constant 0 : i32
    return %c0_i32, %c0_i32_0 : i32, i32
  }
  func.func @transform_4(%arg0: i32) -> (i32, i32) {
    %c0_i32 = arith.constant 0 : i32
    %c0_i32_0 = arith.constant 0 : i32
    %c0_i32_1 = arith.constant 0 : i32
    return %c0_i32, %c0_i32_0 : i32, i32
  }
  func.func @transform_5(%arg0: i32) -> (i32, i32) {
    %c0_i32 = arith.constant 0 : i32
    %c0_i32_0 = arith.constant 0 : i32
    %c0_i32_1 = arith.constant 0 : i32
    return %c0_i32, %c0_i32_0 : i32, i32
  }
  func.func @transform_6(%arg0: i32) -> (i32, i32) {
    %c0_i32 = arith.constant 0 : i32
    %c0_i32_0 = arith.constant 0 : i32
    %c0_i32_1 = arith.constant 0 : i32
    return %c0_i32, %c0_i32_0 : i32, i32
  }
  func.func @transform_7(%arg0: i32) -> (i32, i32) {
    %c0_i32 = arith.constant 0 : i32
    %c0_i32_0 = arith.constant 0 : i32
    return %c0_i32, %arg0 : i32, i32
  }
}

</mosaic_0001>

<bundles_post_ra>
// kernel: tpu_custom_call.1
= control target key start
LH: loop header
LB: loop body
LE: loop exit
PB: predicated region body
PF: predicated region fallthrough
CT: control target
= control target key end

     0   :  { %vm50_vm0 = vcmask 1040384   ;;  %vm477_vm1 = vmmov 1   ;;  %vm43_vm3 = vcmask 72704   ;;  %v478_v5 = vmov 0   ;;  %s594_s0 = inlined_call_operand.vmem [shape: f32[9,128], index: 0, kind: input, shape index: {}]   ;;  %s595_s1 = inlined_call_operand.vmem [shape: f32[16,9], index: 1, kind: input, shape index: {}]   ;;  %s596_s2 = inlined_call_operand.vmem [shape: f32[16,1], index: 2, kind: input, shape index: {}]   ;;  %s597_s3 = inlined_call_operand.vmem [shape: f32[32,16], index: 3, kind: input, shape index: {}]   ;;  %s598_s4 = inlined_call_operand.vmem [shape: f32[32,1], index: 4, kind: input, shape index: {}]   ;;  %s599_s5 = inlined_call_operand.vmem [shape: f32[9,32], index: 5, kind: input, shape index: {}]   ;;  %s600_s6 = inlined_call_operand.vmem [shape: f32[9,1], index: 6, kind: input, shape index: {}]   ;;  %s601_s7 = inlined_call_operand.hbm [shape: f32[9,128], index: 7, kind: output, shape index: {}]  }
   0x1   :  { %v27_v0 = vld [vmem:[%s594_s0] sm:$0xff]  ;;  %v28_v1 = vld [vmem:[%s594_s0 + $0x8] sm:$0x1]  ;;  %vm429_vm2 = vmpackc.low %vm50_vm0, %vm477_vm1  ;;  %451 = vset.pattern.permute.xlu0 %v478_v5 }
   0x2   :  { %v29_v2 = vld [vmem:[%s595_s1] sm:$0xff]  ;;  %v428_v3 = vpack.c.bf16 %v28_v1, %v27_v0 }
   0x3   :  { %v31_v4 = vld [vmem:[%s596_s2] sm:$0xff]  ;;  %404 = vmatprep.mubr.msk.f32.mxu0 %vm43_vm3, %v29_v2 }
   0x4   :  { %430 = vmatprep.subr.msk.bf16.mxu0 %vm429_vm2, %v428_v3  ;;  %35 = vperm.xlu0 %451, %v31_v4  }
   0x5   :  { %12 = vsyncpa [#allocation3], 0  ;;  %433 = vmatpush3.bf16.msk.msra.mxu0 %vm429_vm2, %v428_v3  ;;  %v30_v6 = vld [vmem:[%s595_s1 + $0x8] sm:$0xff]  ;;  %452 = vset.pattern.permute.xlu1 %v478_v5  ;;  %v137_v8 = vld [vmem:[%s598_s4 + $0x10] sm:$0xff]  ;;  %vm159_vm4 = vcmask 130048   ;;  %vm275_vm5 = vcmask 261120  }
   0x6   :  { %v32_v7 = vld [vmem:[%s596_s2 + $0x8] sm:$0xff]  ;;  %v263_v9 = vld [vmem:[%s600_s6] sm:$0xff]  ;;  %v138_v13 = vld [vmem:[%s598_s4 + $0x18] sm:$0xff]  ;;  %s479_s8 = smov [#allocation2]  }
   0x7   :  { %v131_v10 = vld [vmem:[%s597_s3] sm:$0xff]  ;;  %v136_v12 = vld [vmem:[%s598_s4 + $0x8] sm:$0xff]  ;;  %v133_v25 = vld [vmem:[%s597_s3 + $0x10] sm:$0xff]  ;;  %s364_s0 = sshll.u32 %s479_s8, 4  ;;  %s365_s0 = int_to_ptr.vmem [resolvable:$true] %s364_s0 }
   0x8   :  { %405 = vmatmul.mubr.msk.f32.vlgmr.msra.gmra.mrb[0].mxu0 %vm43_vm3, %v30_v6  ;;  %40 = vperm.xlu0 %451, %v32_v7   ;;  %v135_v11 = vld [vmem:[%s598_s4] sm:$0xff]  ;;  %v264_v14 = vld [vmem:[%s600_s6 + $0x8] sm:$0x1]  ;;  %v134_v26 = vld [vmem:[%s597_s3 + $0x18] sm:$0xff]  ;;  %s453_s9 = scalar_lea.vmem %s365_s0, 256  ;;  %p458_p1 = scmp.lt.s32.totalorder %s365_s0, %s365_s0 }
   0x9   :  { %411 = vmatprep.mubr.msk.f32.mxu1 %vm159_vm4, %v131_v10  ;;  %141 = vperm.xlu1 %452, %v135_v11   ;;  %v132_v24 = vld [vmem:[%s597_s3 + $0x8] sm:$0xff]  ;;  %v261_v27 = vld [vmem:[%s599_s5] sm:$0xff]  ;;  %p454_p0 = scmp.ne.s32.totalorder %s365_s0, %s453_s9  ;;  %p459_p2 = scmp.lt.s32.totalorder %s453_s9, %s453_s9 }
   0xa   :  { %425 = vmatprep.mubr.msk.f32.mxu0 %vm275_vm5, %v261_v27  ;;  %v262_v46 = vld [vmem:[%s599_s5 + $0x8] sm:$0x1] }
   0xb   :  { %p460_p3 = por %p459_p2, %p458_p1 }
   0xc   :  { %151 = vperm.xlu0 %451, %v137_v8  }
   0xd   :  { %146 = vperm.xlu1 %452, %v136_v12   ;;  %p461_p4 = pnand %p460_p3, %p454_p0 }
  0x10   :  { %267 = vperm.xlu0 %451, %v263_v9  }
  0x11   :  { %156 = vperm.xlu1 %452, %v138_v13  }
  0x15   :  { %272 = vperm.xlu1 %452, %v264_v14  }
  0x83   :  { %v36_v15 = vpop.permute.xlu0 %35 }
  0x87   :  { %v41_v16 = vpop.permute.xlu0 %40 }
  0x88   :  { %v142_v28 = vpop.permute.xlu1 %141 }
  0x8b   :  { %v152_v38 = vpop.permute.xlu0 %151 }
  0x8c   :  { %v147_v29 = vpop.permute.xlu1 %146 }
  0x8f   :  { %v268_v49 = vpop.permute.xlu0 %267 }
  0x90   :  { %v157_v35 = vpop.permute.xlu1 %156 }
  0x94   :  { %v273_v47 = vpop.permute.xlu1 %272 }
  0xdb   :  { %v406_v17 = vpop.f32.mrb[0].mxu0 }
  0xdc   :  { %v126_v18 = vadd.f32 %v406_v17, %v41_v16  ;;  %v120_v19 = vpop.f32.mrb[1].mxu0 }
  0xdd   :  { %v121_v20 = vadd.f32 %v120_v19, %v36_v15 }
  0xde   :  { %v130_v21 = vmax.f32 %v126_v18, 0.0 }
  0xdf   :  { %v129_v22 = vmax.f32 %v121_v20, 0.0 }
  0xe1   :  { %v434_v23 = vpack.c.bf16 %v130_v21, %v129_v22 }
  0xe3   :  { %435 = vmatprep.subr.bf16.mxu1 %v434_v23 }
  0xe4   :  { %437 = vmatpush3.bf16.msra.mxu1 %v434_v23 }
  0xe7   :  { %412 = vmatmul.mubr.msk.f32.vlgmr.msra.gmra.mrb[0].mxu1 %vm159_vm4, %v132_v24 }
  0xe8   :  { %414 = vmatprep.mubr.msk.f32.mxu1 %vm159_vm4, %v133_v25 }
  0xeb   :  { %415 = vmatmul.mubr.msk.f32.gmra.mrb[2].mxu1 %vm159_vm4, %v134_v26 }
 0x1ba   :  { %v413_v30 = vpop.f32.mrb[0].mxu1 }
 0x1bb   :  { %v244_v31 = vadd.f32 %v413_v30, %v147_v29  ;;  %v238_v32 = vpop.f32.mrb[1].mxu1 }
 0x1bc   :  { %v239_v33 = vadd.f32 %v238_v32, %v142_v28 }
 0x1bd   :  { %v258_v34 = vmax.f32 %v244_v31, 0.0 }
 0x1be   :  { %v257_v36 = vmax.f32 %v239_v33, 0.0  ;;  %v416_v37 = vpop.f32.mrb[2].mxu1 }
 0x1bf   :  { %v254_v39 = vadd.f32 %v416_v37, %v157_v35  ;;  %v248_v40 = vpop.f32.mrb[3].mxu1 }
 0x1c0   :  { %v438_v41 = vpack.c.bf16 %v258_v34, %v257_v36  ;;  %v249_v42 = vadd.f32 %v248_v40, %v152_v38 }
 0x1c1   :  { %v260_v43 = vmax.f32 %v254_v39, 0.0 }
 0x1c2   :  { %v259_v44 = vmax.f32 %v249_v42, 0.0  ;;  %439 = vmatprep.subr.bf16.mxu0 %v438_v41 }
 0x1c3   :  { %441 = vmatpush3.bf16.msra.mxu0 %v438_v41 }
 0x1c4   :  { %v442_v45 = vpack.c.bf16 %v260_v43, %v259_v44 }
 0x1c6   :  { %443 = vmatprep.subr.bf16.mxu0 %v442_v45 }
 0x1c7   :  { %445 = vmatpush3.bf16.msra.mxu0 %v442_v45 }
 0x1ca   :  { %426 = vmatmul.mubr.msk.f32.vlgmr.msra.gmra.mrb[2].mxu0 %vm275_vm5, %v262_v46 }
 0x29d   :  { %v427_v48 = vpop.f32.mrb[2].mxu0 }
 0x29e   :  { %v354_v50 = vadd.f32 %v427_v48, %v273_v47  ;;  %v348_v51 = vpop.f32.mrb[3].mxu0 }
 0x29f   :  { %v349_v52 = vadd.f32 %v348_v51, %v268_v49 }
 0x2a0   :  { %358 = vst [vmem:[#allocation2 + $0x8] sm:$0x1] %v354_v50 }
 0x2a1   :  { %357 = vst [vmem:[#allocation2] sm:$0xff] %v349_v52 }
 0x2a2   :  { %464 = shalt.err (!%p461_p4)
}
 0x2a3   :  { %s465_s11 = scalar_lea.hbm %s601_s7, 256 }
 0x2a4   :  { %p466_p5 = scmp.ne.s32.totalorder %s601_s7, %s465_s11  ;;  %p469_p6 = scmp.lt.u32.totalorder %s465_s11, %s601_s7 }
 0x2a6   :  { %p471_p7 = pnand %p469_p6, %p466_p5 }
 0x2a8   :  { %474 = shalt.err (!%p471_p7)
}
 0x2a9   :  { %s480_s16 = smov 128   ;;  %s481_s17 = smov 8  }
 0x2aa   :  { %370 = dma.vmem_to_hbm [thread:$0]  %s365_s0, 256, %s601_s7, [#allocation3], %s480_s16, %s480_s16, %s481_s17  }
 0x2ab   :  { %475 = dma.done.wait [#allocation3], 256  }
 0x2ac   :  { %476 = vsyncadd [#allocation3], 4294967040 }
 0x2ad   :  { %374 = vsyncpa [#allocation3], 1 }

</bundles_post_ra>
